<compile_context>
chip_gen: v6e
topology: v6e:2x2x1
jax: 0.10.0
libtpu: 0.0.40
codegen_flags: <defaults>
</compile_context>

<pallas_src>
import functools

import jax
import jax.numpy as jnp
from jax.experimental import pallas as pl
from jax.experimental.pallas import tpu as pltpu

NEG_SLOPE = 0.01  # F.leaky_relu default negative slope


def _forward_mean_kernel(xp_ref, w12_ref, b12_ref, wh_ref, bh_ref, out_ref, *, k):
    # Stage 1: [h1 | h2] = leaky_relu((sum_s x_s) @ [W1 | W2]/S + [b1 | b2]).
    # The mean over S is folded into the S-tiled, 1/S-prescaled weights, so
    # this is a single 256-deep-K GEMM with no separate reduction.
    h12 = jnp.dot(xp_ref[...], w12_ref[...],
                  preferred_element_type=jnp.float32) + b12_ref[...]
    h12 = jnp.where(h12 >= 0, h12, NEG_SLOPE * h12)            # (B, 2D)

    # Stage 2 (block-diagonal, lane-padded heads): [logits128 | reg128].
    heads = jnp.dot(h12, wh_ref[...],
                    preferred_element_type=jnp.float32) + bh_ref[...]
    half = wh_ref.shape[-1] // 2                               # lane-aligned (128)
    logits = heads[:, :half]                                   # (B, 128)
    reg = heads[:, half:]                                      # (B, 128)

    # Unnormalized softmax weights (padded class lanes have bias -1e9 so
    # exp underflows to exactly 0; padded reg lanes are exactly 0).
    m = jnp.max(logits, axis=-1, keepdims=True)
    e = jnp.exp(logits - m)                                    # (B, 128)

    # The softmax denominator cancels in num/den, so it is never computed.
    num = jnp.sum(reg * e, axis=-1, keepdims=True)             # (B, 1)
    den = jnp.sum(e, axis=-1, keepdims=True)                   # (B, 1)
    age = num / den

    # Single lane-dense output slab: lane K = age, all other lanes = logits
    # (padded logits never escape; the wrapper slices [:, :K]).
    lane = jax.lax.broadcasted_iota(jnp.int32, out_ref.shape, dimension=1)
    out_ref[...] = jnp.where(lane == k, age, logits)


def prepare_fused_params(params, seq_len, feat_dim):
    """One-time parameter fusion/repack (done at model-load time)."""
    D, S = feat_dim, seq_len
    K = params["wc"].shape[1]
    pad = ((K + 1 + 127) // 128) * 128        # lane-aligned head width (>= K+1)

    # Stage 1: concat W1 || W2, tile S times along K, fold the 1/S of mean(x).
    w12 = jnp.concatenate([params["w1"], params["w2"]], axis=1)        # (D, 2D)
    w12_tiled = jnp.tile(w12, (S, 1)) * (1.0 / S)                      # (S*D, 2D)
    b12 = jnp.concatenate([params["b1"], params["b2"]], axis=1)        # (1, 2D)

    # Stage 2: block-diagonal [Wc_pad 0; 0 Wr_pad], bias [bc_pad | br+centers].
    # Padded class lanes: zero weights + bias -1e9 (not -inf -> no inf-inf NaN).
    # Padded regression lanes: zero weights + zero bias.
    wc_pad = jnp.pad(params["wc"], ((0, 0), (0, pad - K)))             # (D, pad)
    wr_pad = jnp.pad(params["wr"], ((0, 0), (0, pad - K)))             # (D, pad)
    bc_pad = jnp.concatenate(
        [params["bc"], jnp.full((1, pad - K), -1e9, jnp.float32)], axis=1)
    brc_pad = jnp.pad(params["br"] + params["centers"],
                      ((0, 0), (0, pad - K)))
    zeros = jnp.zeros((D, pad), jnp.float32)
    w_heads = jnp.concatenate(
        [jnp.concatenate([wc_pad, zeros], axis=1),
         jnp.concatenate([zeros, wr_pad], axis=1)], axis=0)            # (2D, 2*pad)
    b_heads = jnp.concatenate([bc_pad, brc_pad], axis=1)               # (1, 2*pad)

    return dict(w12=w12_tiled, b12=b12, wh=w_heads, bh=b_heads), K


@functools.partial(jax.jit, static_argnames=("k",))
def transformer_forward_mean(x, w12, b12, wh, bh, *, k):
    """x: (B, S, D) f32 -> (classification_logits (B, K), age_pred (B,))."""
    B, S, D = x.shape
    xp = x.reshape(B, S * D)                       # fold mean into GEMM K dim
    pad = wh.shape[-1] // 2                        # lane-dense output width

    vmem = pl.BlockSpec(memory_space=pltpu.MemorySpace.VMEM)
    out = pl.pallas_call(
        functools.partial(_forward_mean_kernel, k=k),
        out_shape=jax.ShapeDtypeStruct((B, pad), jnp.float32),
        in_specs=[vmem] * 5,
        out_specs=vmem,
    )(xp, w12, b12, wh, bh)

    return out[:, :k], out[:, k]


def init_params(key, in_size, num_outputs, min_age, age_interval):
    """Deterministic synthetic parameter init (PyTorch-Linear-style uniform)."""
    keys = jax.random.split(key, 8)

    def linear(kw, kb, fan_in, fan_out):
        bound = 1.0 / float(fan_in) ** 0.5
        w = jax.random.uniform(kw, (fan_in, fan_out), jnp.float32, -bound, bound)
        b = jax.random.uniform(kb, (1, fan_out), jnp.float32, -bound, bound)
        return w, b

    w1, b1 = linear(keys[0], keys[1], in_size, in_size)        # fc_first_stage
    wc, bc = linear(keys[2], keys[3], in_size, num_outputs)    # class_head
    w2, b2 = linear(keys[4], keys[5], in_size, in_size)        # fc_second_stage
    # regression_heads: num_outputs Linear(in_size, 1) layers, stacked (D, K)
    wr, br = linear(keys[6], keys[7], in_size, num_outputs)
    centers = (min_age + 0.5 * age_interval
               + jnp.arange(num_outputs, dtype=jnp.float32) * age_interval
               ).reshape(1, num_outputs)
    return dict(w1=w1, b1=b1, wc=wc, bc=bc, w2=w2, b2=b2,
                wr=wr, br=br, centers=centers)


def _reference_forward_mean(x, p):
    """Pure-JAX reference for correctness checking."""
    base = jnp.mean(x, axis=1)
    lr = lambda v: jnp.where(v >= 0, v, NEG_SLOPE * v)
    h1 = lr(base @ p["w1"] + p["b1"])
    logits = h1 @ p["wc"] + p["bc"]
    w = jax.nn.softmax(logits, axis=-1)
    h2 = lr(base @ p["w2"] + p["b2"])
    reg = h2 @ p["wr"] + p["br"] + p["centers"]
    age = jnp.sum(reg * w, axis=-1) / jnp.sum(w, axis=-1)
    return logits, age


if __name__ == "__main__":
    B, S, D, K = 2, 8, 32, 10
    min_age, max_age, age_interval = 0.0, 100.0, 10.0

    key = jax.random.PRNGKey(0)
    k_x, k_p = jax.random.split(key)
    x = jax.random.normal(k_x, (B, S, D), dtype=jnp.float32)
    params = init_params(k_p, D, K, min_age, age_interval)
    fused, num_classes = prepare_fused_params(params, S, D)

    logits, age_pred = transformer_forward_mean(
        x, fused["w12"], fused["b12"], fused["wh"], fused["bh"], k=num_classes)
    jax.block_until_ready((logits, age_pred))

    ref_logits, ref_age = _reference_forward_mean(x, params)
    assert logits.shape == (B, K) and age_pred.shape == (B,)
    assert jnp.allclose(logits, ref_logits, atol=1e-4, rtol=1e-4)
    assert jnp.allclose(age_pred, ref_age, atol=1e-3, rtol=1e-4)

    print("KERNEL_OK")
</pallas_src>

<mosaic_0001>
module attributes {stable_mosaic.version = 11 : i64} {
  func.func @_forward_mean_kernel(%arg0: memref<2x256xf32, #tpu.memory_space<vmem>>, %arg1: memref<256x64xf32, #tpu.memory_space<vmem>>, %arg2: memref<1x64xf32, #tpu.memory_space<vmem>>, %arg3: memref<64x256xf32, #tpu.memory_space<vmem>>, %arg4: memref<1x256xf32, #tpu.memory_space<vmem>>, %arg5: memref<2x128xf32, #tpu.memory_space<vmem>>) attributes {dimension_semantics = [], scalar_prefetch = 0 : i64, scratch_operands = 0 : i64, tpu.core_type = #tpu.core_type<tc>} {
    %c0 = arith.constant 0 : index
    %c0_0 = arith.constant 0 : index
    %0 = vector.load %arg0[%c0, %c0_0] : memref<2x256xf32, #tpu.memory_space<vmem>>, vector<2x256xf32>
    %c0_1 = arith.constant 0 : index
    %c0_2 = arith.constant 0 : index
    %1 = vector.load %arg1[%c0_1, %c0_2] : memref<256x64xf32, #tpu.memory_space<vmem>>, vector<256x64xf32>
    %cst = arith.constant dense<0.000000e+00> : vector<2x64xf32>
    %2 = tpu.matmul %0, %1, %cst {dimension_numbers = #tpu.dot_dimension_numbers<[1], [0], [0], [1], [0, 0, 1, 1], [], []>} : vector<2x256xf32>, vector<256x64xf32>, vector<2x64xf32> -> vector<2x64xf32>
    %c0_3 = arith.constant 0 : index
    %c0_4 = arith.constant 0 : index
    %3 = vector.load %arg2[%c0_3, %c0_4] : memref<1x64xf32, #tpu.memory_space<vmem>>, vector<1x64xf32>
    %4 = vector.broadcast %3 : vector<1x64xf32> to vector<2x64xf32>
    %5 = arith.addf %2, %4 : vector<2x64xf32>
    %cst_5 = arith.constant 0.000000e+00 : f32
    %6 = vector.broadcast %cst_5 : f32 to vector<2x64xf32>
    %7 = arith.cmpf oge, %5, %6 : vector<2x64xf32>
    %cst_6 = arith.constant 0.00999999977 : f32
    %8 = vector.broadcast %cst_6 : f32 to vector<2x64xf32>
    %9 = arith.mulf %8, %5 : vector<2x64xf32>
    %10 = arith.select %7, %5, %9 : vector<2x64xi1>, vector<2x64xf32>
    %c0_7 = arith.constant 0 : index
    %c0_8 = arith.constant 0 : index
    %11 = vector.load %arg3[%c0_7, %c0_8] : memref<64x256xf32, #tpu.memory_space<vmem>>, vector<64x256xf32>
    %cst_9 = arith.constant dense<0.000000e+00> : vector<2x256xf32>
    %12 = tpu.matmul %10, %11, %cst_9 {dimension_numbers = #tpu.dot_dimension_numbers<[1], [0], [0], [1], [0, 0, 1, 1], [], []>} : vector<2x64xf32>, vector<64x256xf32>, vector<2x256xf32> -> vector<2x256xf32>
    %c0_10 = arith.constant 0 : index
    %c0_11 = arith.constant 0 : index
    %13 = vector.load %arg4[%c0_10, %c0_11] : memref<1x256xf32, #tpu.memory_space<vmem>>, vector<1x256xf32>
    %14 = vector.broadcast %13 : vector<1x256xf32> to vector<2x256xf32>
    %15 = arith.addf %12, %14 : vector<2x256xf32>
    %16 = vector.extract_strided_slice %15 {offsets = [0, 0], sizes = [2, 128], strides = [1, 1]} : vector<2x256xf32> to vector<2x128xf32>
    %17 = vector.extract_strided_slice %15 {offsets = [0, 128], sizes = [2, 128], strides = [1, 1]} : vector<2x256xf32> to vector<2x128xf32>
    %cst_12 = arith.constant dense<0xFF800000> : vector<2xf32>
    %18 = vector.multi_reduction <maximumf>, %16, %cst_12 [1] : vector<2x128xf32> to vector<2xf32>
    %19 = vector.shape_cast %18 : vector<2xf32> to vector<2x1xf32>
    %20 = vector.broadcast %19 : vector<2x1xf32> to vector<2x128xf32>
    %21 = arith.subf %16, %20 : vector<2x128xf32>
    %22 = math.exp %21 : vector<2x128xf32>
    %23 = arith.mulf %17, %22 : vector<2x128xf32>
    %cst_13 = arith.constant dense<0.000000e+00> : vector<2xf32>
    %24 = vector.multi_reduction <add>, %23, %cst_13 [1] : vector<2x128xf32> to vector<2xf32>
    %25 = vector.shape_cast %24 : vector<2xf32> to vector<2x1xf32>
    %cst_14 = arith.constant dense<0.000000e+00> : vector<2xf32>
    %26 = vector.multi_reduction <add>, %22, %cst_14 [1] : vector<2x128xf32> to vector<2xf32>
    %27 = vector.shape_cast %26 : vector<2xf32> to vector<2x1xf32>
    %28 = arith.divf %25, %27 : vector<2x1xf32>
    %29 = tpu.iota {dimensions = array<i32: 1>} : vector<2x128xi32>
    %c10_i32 = arith.constant 10 : i32
    %30 = vector.broadcast %c10_i32 : i32 to vector<2x128xi32>
    %31 = arith.cmpi eq, %29, %30 : vector<2x128xi32>
    %32 = vector.shape_cast %28 : vector<2x1xf32> to vector<2x1xf32>
    %33 = vector.broadcast %32 : vector<2x1xf32> to vector<2x128xf32>
    %34 = arith.select %31, %33, %16 : vector<2x128xi1>, vector<2x128xf32>
    %c0_15 = arith.constant 0 : index
    %c0_16 = arith.constant 0 : index
    %35 = vector.load %arg5[%c0_15, %c0_16] : memref<2x128xf32, #tpu.memory_space<vmem>>, vector<2x128xf32>
    tpu.vector_store %arg5[%c0_15, %c0_16], %34 {strides = array<i32>} : memref<2x128xf32, #tpu.memory_space<vmem>>, vector<2x128xf32>,
    return
  }
}

</mosaic_0001>

<bundles_post_ra>
// kernel: transformer_forward_mean.1
= control target key start
LH: loop header
LB: loop body
LE: loop exit
PB: predicated region body
PF: predicated region fallthrough
CT: control target
= control target key end

     0   :  { %v315_v50 = vmov 0.0   ;;  %vm172_vm1 = vcmask 523264   ;;  %v162_v58 = vlaneseq  ;;  %vm247_vm2 = vcmask 1041408   ;;  %s505_s1 = inlined_call_operand.vmem [shape: f32[256,64], index: 1, kind: input, shape index: {}]   ;;  %s506_s0 = inlined_call_operand.vmem [shape: f32[2,256], index: 0, kind: input, shape index: {}]   ;;  %s507_s3 = inlined_call_operand.vmem [shape: f32[64,256], index: 3, kind: input, shape index: {}]   ;;  %s508_s2 = inlined_call_operand.vmem [shape: f32[1,64], index: 2, kind: input, shape index: {}]   ;;  %s509_s4 = inlined_call_operand.vmem [shape: f32[1,256], index: 4, kind: input, shape index: {}]   ;;  %s510_s5 = inlined_call_operand.vmem [shape: f32[2,128], index: 5, kind: output, shape index: {}]  }
   0x1   :  { %v52_v0 = vld [vmem:[%s505_s1 + $0xf8] sm:$0xff]  ;;  %v51_v2 = vld [vmem:[%s505_s1 + $0xf0] sm:$0xff]  ;;  %v50_v4 = vld [vmem:[%s505_s1 + $0xe8] sm:$0xff]  ;;  %240 = vmatprep.mubr.f32.mxu1 %v315_v50 }
   0x2   :  { %v36_v1 = vld [vmem:[%s505_s1 + $0x78] sm:$0xff]  ;;  %275 = vmatprep.subr.mxu0 %v52_v0  ;;  %v35_v3 = vld [vmem:[%s505_s1 + $0x70] sm:$0xff]  ;;  %v34_v5 = vld [vmem:[%s505_s1 + $0x68] sm:$0xff]  ;;  %v163_v59 = vshrl.u32 %v162_v58, 7 }
   0x3   :  { %276 = vmatpush3.msra.mxu0 %v36_v1  ;;  %v49_v6 = vld [vmem:[%s505_s1 + $0xe0] sm:$0xff]  ;;  %v48_v8 = vld [vmem:[%s505_s1 + $0xd8] sm:$0xff]  ;;  %v47_v10 = vld [vmem:[%s505_s1 + $0xd0] sm:$0xff] }
   0x4   :  { %277 = vmatprep.subr.mxu0 %v51_v2  ;;  %v33_v7 = vld [vmem:[%s505_s1 + $0x60] sm:$0xff]  ;;  %v32_v9 = vld [vmem:[%s505_s1 + $0x58] sm:$0xff]  ;;  %v31_v11 = vld [vmem:[%s505_s1 + $0x50] sm:$0xff]  ;;  %v164_v60 = vsub.s32 0, %v163_v59 }
   0x5   :  { %278 = vmatpush3.msra.mxu0 %v35_v3  ;;  %v46_v12 = vld [vmem:[%s505_s1 + $0xc8] sm:$0xff]  ;;  %v273_v13 = vld.sshfl [vmem:[%s506_s0] sm:$0x33 pattern:$0x76325410]  ;;  %v159_v16 = vld [vmem:[%s507_s3 + $0x78] sm:$0xff] }
   0x6   :  { %279 = vmatprep.subr.mxu0 %v50_v4  ;;  %v30_v14 = vld [vmem:[%s505_s1 + $0x48] sm:$0xff]  ;;  %v68_v15 = vcombine.high %v273_v13, %v273_v13  ;;  %v158_v17 = vld [vmem:[%s507_s3 + $0x70] sm:$0xff]  ;;  %v45_v18 = vld [vmem:[%s505_s1 + $0xc0] sm:$0xff]  ;;  %192 = vmatprep.subr.mxu1 %v159_v16 }
   0x7   :  { %280 = vmatpush3.msra.mxu0 %v34_v5  ;;  %v157_v19 = vld [vmem:[%s507_s3 + $0x68] sm:$0xff]  ;;  %v29_v20 = vld [vmem:[%s505_s1 + $0x40] sm:$0xff]  ;;  %v44_v22 = vld [vmem:[%s505_s1 + $0xb8] sm:$0xff]  ;;  %193 = vmatpush1.msra.mxu1 %v158_v17  ;;  %v168_v5 = vsub.s32 1, %v163_v59 }
   0x8   :  { %281 = vmatprep.subr.mxu0 %v49_v6  ;;  %135 = vmatprep.mubr.f32.mxu0 %v68_v15  ;;  %v156_v21 = vld [vmem:[%s507_s3 + $0x60] sm:$0xff]  ;;  %v155_v23 = vld [vmem:[%s507_s3 + $0x58] sm:$0xff]  ;;  %v154_v25 = vld [vmem:[%s507_s3 + $0x50] sm:$0xff] }
   0x9   :  { %282 = vmatpush3.msra.mxu0 %v33_v7  ;;  %v28_v24 = vld [vmem:[%s505_s1 + $0x38] sm:$0xff]  ;;  %194 = vmatprep.subr.mxu1 %v157_v19  ;;  %v43_v26 = vld [vmem:[%s505_s1 + $0xb0] sm:$0xff]  ;;  %v42_v28 = vld [vmem:[%s505_s1 + $0xa8] sm:$0xff] }
   0xa   :  { %283 = vmatprep.subr.mxu0 %v48_v8  ;;  %195 = vmatpush1.msra.mxu1 %v156_v21  ;;  %v27_v27 = vld [vmem:[%s505_s1 + $0x30] sm:$0xff]  ;;  %v26_v29 = vld [vmem:[%s505_s1 + $0x28] sm:$0xff]  ;;  %v41_v30 = vld [vmem:[%s505_s1 + $0xa0] sm:$0xff] }
   0xb   :  { %284 = vmatpush3.msra.mxu0 %v32_v9  ;;  %196 = vmatprep.subr.mxu1 %v155_v23  ;;  %v25_v31 = vld [vmem:[%s505_s1 + $0x20] sm:$0xff]  ;;  %v40_v32 = vld [vmem:[%s505_s1 + $0x98] sm:$0xff]  ;;  %v39_v34 = vld [vmem:[%s505_s1 + $0x90] sm:$0xff] }
   0xc   :  { %285 = vmatprep.subr.mxu0 %v47_v10  ;;  %197 = vmatpush1.msra.mxu1 %v154_v25  ;;  %v24_v33 = vld [vmem:[%s505_s1 + $0x18] sm:$0xff]  ;;  %v23_v35 = vld [vmem:[%s505_s1 + $0x10] sm:$0xff]  ;;  %v38_v36 = vld [vmem:[%s505_s1 + $0x88] sm:$0xff] }
   0xd   :  { %286 = vmatpush3.msra.mxu0 %v31_v11  ;;  %v22_v37 = vld [vmem:[%s505_s1 + $0x8] sm:$0xff]  ;;  %v37_v38 = vld [vmem:[%s505_s1 + $0x80] sm:$0xff]  ;;  %v151_v42 = vld [vmem:[%s507_s3 + $0x38] sm:$0xff] }
   0xe   :  { %287 = vmatprep.subr.mxu0 %v46_v12  ;;  %v21_v39 = vld [vmem:[%s505_s1] sm:$0xff]  ;;  %v153_v40 = vld [vmem:[%s507_s3 + $0x48] sm:$0xff]  ;;  %v150_v43 = vld [vmem:[%s507_s3 + $0x30] sm:$0xff] }
   0xf   :  { %288 = vmatpush3.msra.mxu0 %v30_v14  ;;  %198 = vmatprep.subr.mxu1 %v153_v40  ;;  %v152_v41 = vld [vmem:[%s507_s3 + $0x40] sm:$0xff]  ;;  %v149_v44 = vld [vmem:[%s507_s3 + $0x28] sm:$0xff]  ;;  %v147_v46 = vld [vmem:[%s507_s3 + $0x18] sm:$0xff]  ;;  %v264_v14 = vand.u32 127, %v162_v58 }
  0x10   :  { %289 = vmatprep.subr.mxu0 %v45_v18  ;;  %199 = vmatpush1.msra.mxu1 %v152_v41  ;;  %v148_v45 = vld [vmem:[%s507_s3 + $0x20] sm:$0xff]  ;;  %v146_v47 = vld [vmem:[%s507_s3 + $0x10] sm:$0xff]  ;;  %v145_v48 = vld [vmem:[%s507_s3 + $0x8] sm:$0xff] }
  0x11   :  { %290 = vmatpush3.msra.mxu0 %v29_v20  ;;  %200 = vmatprep.subr.mxu1 %v151_v42  ;;  %v144_v49 = vld [vmem:[%s507_s3] sm:$0xff]  ;;  %vm265_vm3 = vcmp.eq.s32.totalorder %v264_v14, 10 }
  0x12   :  { %291 = vmatprep.subr.mxu0 %v44_v22  ;;  %201 = vmatpush1.msra.mxu1 %v150_v43  ;;  %v272_v52 = vld [vmem:[%s508_s2] ss:$0 sm:$0xff] }
  0x13   :  { %292 = vmatpush3.msra.mxu0 %v28_v24  ;;  %202 = vmatprep.subr.mxu1 %v149_v44  ;;  %v160_v61 = vld [vmem:[%s509_s4] sm:$0x3] }
  0x14   :  { %293 = vmatprep.subr.mxu0 %v43_v26  ;;  %203 = vmatpush1.msra.mxu1 %v148_v45  ;;  %v165_v62 = vrot.slane %v160_v61, %v164_v60  ;;  %v169_v6 = vrot.slane %v160_v61, %v168_v5 }
  0x15   :  { %294 = vmatpush3.msra.mxu0 %v27_v27  ;;  %204 = vmatprep.subr.mxu1 %v147_v46 }
  0x16   :  { %295 = vmatprep.subr.mxu0 %v42_v28  ;;  %205 = vmatpush1.msra.mxu1 %v146_v47 }
  0x17   :  { %296 = vmatpush3.msra.mxu0 %v26_v29  ;;  %206 = vmatprep.subr.mxu1 %v145_v48 }
  0x18   :  { %297 = vmatprep.subr.mxu0 %v41_v30  ;;  %207 = vmatpush1.msra.mxu1 %v144_v49 }
  0x19   :  { %298 = vmatpush3.msra.mxu0 %v25_v31 }
  0x1a   :  { %299 = vmatprep.subr.mxu0 %v40_v32 }
  0x1b   :  { %300 = vmatpush3.msra.mxu0 %v24_v33 }
  0x1c   :  { %301 = vmatprep.subr.mxu0 %v39_v34 }
  0x1d   :  { %302 = vmatpush3.msra.mxu0 %v23_v35 }
  0x1e   :  { %303 = vmatprep.subr.mxu0 %v38_v36 }
  0x1f   :  { %304 = vmatpush3.msra.mxu0 %v22_v37 }
  0x20   :  { %305 = vmatprep.subr.mxu0 %v37_v38 }
  0x21   :  { %306 = vmatpush3.msra.mxu0 %v21_v39 }
  0x22   :  { %136 = vmatmul.mubr.f32.vlgmr.msra.gmra.mxu0 %v273_v13 }
  0xe2   :  { %v307_v51 = vpop.f32.mrf.mxu0 }
  0xe4   :  { %v308_v53 = vpop.f32.mrf.mxu0 }
  0xe5   :  { %v309_v54 = vadd.f32 %v308_v53, %v307_v51 }
  0xe7   :  { %v138_v55 = vadd.f32 %v309_v54, %v272_v52 }
  0xe9   :  { %v142_v56 = vmul.f32 0.01, %v138_v55  ;;  %vm141_vm0 = vcmp.ge.f32.partialorder %v138_v55, 0.0 }
  0xeb   :  { %v143_v57 = vsel %vm141_vm0, %v138_v55, %v142_v56 }
  0xec   :  { %274 = vmatmul.mubr.msk.f32.vlgmr.msra.gmra.mxu1 %vm172_vm1, %v143_v57 }
 0x1ac   :  { %v242_v63 = vpop.f32.mrf.mxu1 }
 0x1ad   :  { %v243_v0 = vadd.f32 %v242_v63, %v165_v62 }
 0x1ae   :  { %v244_v7 = vpop.f32.mrf.mxu1 }
 0x1af   :  { %v248_v1 = vsel %vm247_vm2, %v243_v0, -inf  ;;  %v245_v8 = vadd.f32 %v244_v7, %v169_v6 }
 0x1b0   :  { %249 = vmax.xlane.f32.xlu0 %v248_v1 }
 0x239   :  { %v250_v2 = vpop.xlane.xlu0 %249 }
 0x23a   :  { %v251_v3 = vsub.f32 %v243_v0, %v250_v2 }
 0x23c   :  { %v252_v4 = vmul.f32 1.442695, %v251_v3 }
 0x23e   :  { %311 = vpow2.f32 %v252_v4 }
 0x24b   :  { %v312_v9 = vpop.eup %311 }
 0x24c   :  { %v258_v10 = vsel %vm247_vm2, %v312_v9, 0.0  ;;  %v254_v11 = vmul.f32 %v312_v9, %v245_v8 }
 0x24d   :  { %259 = vadd.xlane.f32.xlu0 %v258_v10 }
 0x24e   :  { %v255_v12 = vsel %vm247_vm2, %v254_v11, 0.0 }
 0x24f   :  { %256 = vadd.xlane.f32.xlu1 %v255_v12 }
 0x2d6   :  { %v260_v13 = vpop.xlane.xlu0 %259 }
 0x2d7   :  { %313 = vrcp.f32 %v260_v13 }
 0x2d8   :  { %v257_v16 = vpop.xlane.xlu1 %256 }
 0x2e4   :  { %v314_v15 = vpop.eup %313 }
 0x2e5   :  { %v262_v17 = vmul.f32 %v314_v15, %v257_v16 }
 0x2e7   :  { %v266_v18 = vsel %vm265_vm3, %v262_v17, %v243_v0 }
 0x2e8   :  { %267 = vst [vmem:[%s510_s5] sm:$0x3] %v266_v18 }

</bundles_post_ra>
